<compile_context>
chip_gen: v7x
topology: tpu7x:2x2x1
jax: 0.10.0
libtpu: 0.0.40
codegen_flags: <defaults>
</compile_context>

<pallas_src>
import jax
import jax.numpy as jnp
from jax.experimental import pallas as pl
from jax.experimental.pallas import tpu as pltpu


# ------------------------------- kernels ------------------------------------

def _layer1_kernel(a_ref, xw1_ref, b1_ref, w2_ref, z1_ref):
    """Row tile of layer 1 (+ the W2 matmul hoisted out of layer 2):
         z1_tile = relu(A_tile @ (X @ W1) + b1) @ W2
    All MXU inputs are bf16; accumulation is f32."""
    h1 = jnp.maximum(
        jnp.dot(a_ref[...], xw1_ref[...], preferred_element_type=jnp.float32)
        + b1_ref[...], 0.0)
    z1_ref[...] = jnp.dot(h1.astype(jnp.bfloat16), w2_ref[...],
                          preferred_element_type=jnp.float32
                          ).astype(z1_ref.dtype)


def _layer2_pool_kernel(a_ref, z1_ref, b2_ref, pool_ref, part_ref):
    """Row tile of layer 2 + its (un-normalized) mean-pool partial:
         h2_tile    = relu(A_tile @ Z1 + b2)
         partial[i] = onehot[:, tile] @ h2_tile
    Partials are summed / normalized / fed to fc outside the kernel."""
    h2 = jnp.maximum(
        jnp.dot(a_ref[...], z1_ref[...], preferred_element_type=jnp.float32)
        + b2_ref[...], 0.0)
    partial = jnp.dot(pool_ref[...], h2.astype(jnp.bfloat16),
                      preferred_element_type=jnp.float32)
    part_ref[...] = partial[None, :, :]


# ------------------------------- wrapper ------------------------------------

def _round_up(x, m):
    return ((x + m - 1) // m) * m


def _vmem_limit_bytes():
    """~75% of physical VMEM (gen-aware: v7x has 64 MiB, v5e/v6e 128 MiB)."""
    cap = 64 * 1024 * 1024
    try:
        cap = getattr(pltpu.get_tpu_info(), "vmem_capacity_bytes", cap)
    except Exception:
        pass
    return int(cap * 3 // 4)


def _pick_row_tile(n_pad, h_pad, g, vmem_budget):
    """Largest 128-multiple row tile whose working set fits the VMEM budget,
    keeping >= 2 grid steps so the 'parallel' axis can shard on v7x."""
    best = 128
    for tm in (1024, 512, 256):
        if n_pad % tm != 0 or n_pad // tm < 2:
            continue
        need = (2 * tm * n_pad * 2        # double-buffered bf16 A row tile
                + n_pad * h_pad * 2       # resident XW1 / Z1 (bf16)
                + h_pad * h_pad * 2       # resident W2 (bf16)
                + 2 * tm * h_pad * 4      # f32 intermediates (h1 / h2)
                + 2 * g * tm * 2          # pool tile (bf16)
                + 2 * g * h_pad * 4)      # pooled partial output
        if need <= vmem_budget:
            best = tm
            break
    return best


def gnn_forward_pallas(a_bf16, xw1_bf16, p, pool_bf16, counts):
    n_pad = a_bf16.shape[0]
    g, h_pad = pool_bf16.shape[0], xw1_bf16.shape[1]

    vmem_limit = _vmem_limit_bytes()
    tm = _pick_row_tile(n_pad, h_pad, g, vmem_limit)
    grid = (n_pad // tm,)
    cp = pltpu.CompilerParams(dimension_semantics=("parallel",),
                              vmem_limit_bytes=vmem_limit)

    # ---- kernel 1: layer-1 row tiles (+ hoisted W2 matmul), row-parallel ----
    # TODO(synk): add pipeline_mode=pl.Buffered(3) on the A spec if profiling
    # shows exposed DMA on the A-tile stream.
    z1 = pl.pallas_call(
        _layer1_kernel,
        out_shape=jax.ShapeDtypeStruct((n_pad, h_pad), jnp.bfloat16),
        grid=grid,
        in_specs=[
            pl.BlockSpec((tm, n_pad), lambda i: (i, 0)),        # A row tile
            pl.BlockSpec((n_pad, h_pad), lambda i: (0, 0)),     # X @ W1 (resident)
            pl.BlockSpec((1, h_pad), lambda i: (0, 0)),         # b1
            pl.BlockSpec((h_pad, h_pad), lambda i: (0, 0)),     # W2 (resident)
        ],
        out_specs=pl.BlockSpec((tm, h_pad), lambda i: (i, 0)),
        compiler_params=cp,
    )(a_bf16, xw1_bf16, p["b1"], p["w2"])

    # ---- kernel 2: layer-2 row tiles + per-tile pooled partials, parallel ----
    partials = pl.pallas_call(
        _layer2_pool_kernel,
        out_shape=jax.ShapeDtypeStruct((grid[0], g, h_pad), jnp.float32),
        grid=grid,
        in_specs=[
            pl.BlockSpec((tm, n_pad), lambda i: (i, 0)),        # A row tile
            pl.BlockSpec((n_pad, h_pad), lambda i: (0, 0)),     # Z1 (resident)
            pl.BlockSpec((1, h_pad), lambda i: (0, 0)),         # b2
            pl.BlockSpec((g, tm), lambda i: (0, i)),            # pool column tile
        ],
        out_specs=pl.BlockSpec((1, g, h_pad), lambda i: (i, 0, 0)),
        compiler_params=cp,
    )(a_bf16, z1, p["b2"], pool_bf16)

    # tiny [G, H_pad] epilogue in plain JAX: sum partials, mean-divide, fc
    pooled = partials.sum(axis=0) / counts[:, None]
    return pooled @ p["wfc"] + p["bfc"]


# --------------------------- plain-JAX glue ----------------------------------

def build_norm_adj(edge_index, num_nodes):
    """Dense D^{-1/2} (A + I) D^{-1/2} from edge_index [2, E] (f32)."""
    a = jnp.zeros((num_nodes, num_nodes), jnp.float32)
    a = a.at[edge_index[1], edge_index[0]].add(1.0)   # A[dst, src] = 1
    a = a + jnp.eye(num_nodes, dtype=jnp.float32)     # self loops
    deg = a.sum(axis=1)
    dinv = jax.lax.rsqrt(deg)
    return dinv[:, None] * a * dinv[None, :]


def _pad2(a, rows, cols):
    return jnp.pad(a, ((0, rows - a.shape[0]), (0, cols - a.shape[1])))


def gnn_model(x, edge_index, batch, params, num_graphs):
    n = x.shape[0]
    h = params["w1"].shape[1]
    h_pad = _round_up(h, 128)
    n_pad = _round_up(max(n, 128), 128)

    # Normalized adjacency, zero-padded (exact: padded rows/cols never reach
    # real outputs), cast once to bf16 for the MXU.
    a = _pad2(build_norm_adj(edge_index, n), n_pad, n_pad).astype(jnp.bfloat16)

    # Precompute XW1 = X @ W1 in the wrapper (F << H, so this removes the
    # width-F MXU pass from the kernel entirely); pad to a lane-dense slab.
    xw1 = x.astype(jnp.float32) @ params["w1"].astype(jnp.float32)   # [N, H]
    xw1 = _pad2(xw1, n_pad, h_pad).astype(jnp.bfloat16)

    # Exact 0/1 one-hot segment matrix in bf16; 1/count division is done in f32
    # after the kernels so no reciprocal rounding enters the MXU.
    onehot = batch[None, :] == jnp.arange(num_graphs)[:, None]       # [G, N]
    counts = jnp.maximum(onehot.sum(axis=1).astype(jnp.float32), 1.0)
    pool = jnp.pad(onehot.astype(jnp.bfloat16), ((0, 0), (0, n_pad - n)))

    p = {
        "b1": _pad2(params["b1"].reshape(1, -1), 1, h_pad).astype(jnp.float32),
        "w2": _pad2(params["w2"], h_pad, h_pad).astype(jnp.bfloat16),
        "b2": _pad2(params["b2"].reshape(1, -1), 1, h_pad).astype(jnp.float32),
        "wfc": _pad2(params["wfc"], h_pad, 1).astype(jnp.float32),
        "bfc": params["bfc"].reshape(1, 1).astype(jnp.float32),
    }
    return gnn_forward_pallas(a, xw1, p, pool, counts)


# --------------------------------- demo --------------------------------------

if __name__ == "__main__":
    num_node_features = 1
    hidden_dim = 64
    nodes_per_graph = 128
    num_graphs = 2
    num_nodes = nodes_per_graph * num_graphs      # 256 nodes -> 2 row tiles

    key = jax.random.PRNGKey(0)
    kx, k1, k2, k3 = jax.random.split(key, 4)

    x = jax.random.normal(kx, (num_nodes, num_node_features), jnp.float32)

    # two undirected chain graphs
    edges = []
    for gidx in range(num_graphs):
        base = gidx * nodes_per_graph
        for i in range(nodes_per_graph - 1):
            edges.append((base + i, base + i + 1))
            edges.append((base + i + 1, base + i))
    edge_index = jnp.array(edges, dtype=jnp.int32).T                  # [2, E]
    batch = jnp.repeat(jnp.arange(num_graphs, dtype=jnp.int32), nodes_per_graph)

    params = {
        "w1": 0.1 * jax.random.normal(k1, (num_node_features, hidden_dim), jnp.float32),
        "b1": jnp.zeros((hidden_dim,), jnp.float32),
        "w2": 0.1 * jax.random.normal(k2, (hidden_dim, hidden_dim), jnp.float32),
        "b2": jnp.zeros((hidden_dim,), jnp.float32),
        "wfc": 0.1 * jax.random.normal(k3, (hidden_dim, 1), jnp.float32),
        "bfc": jnp.zeros((1,), jnp.float32),
    }

    out = gnn_model(x, edge_index, batch, params, num_graphs)
    out = jax.block_until_ready(out)
    assert out.shape == (num_graphs, 1)

    # plain-JAX f32 reference (loose tolerance: kernel uses bf16 MXU inputs)
    a_ref = build_norm_adj(edge_index, num_nodes)
    h1_ref = jnp.maximum(a_ref @ (x @ params["w1"]) + params["b1"][None, :], 0.0)
    h2_ref = jnp.maximum(a_ref @ (h1_ref @ params["w2"]) + params["b2"][None, :], 0.0)
    onehot_ref = (batch[None, :] == jnp.arange(num_graphs)[:, None]).astype(jnp.float32)
    pooled_ref = (onehot_ref @ h2_ref) / onehot_ref.sum(axis=1, keepdims=True)
    ref = pooled_ref @ params["wfc"] + params["bfc"][None, :]
    assert jnp.allclose(out, ref, atol=3e-2, rtol=1e-1), (out, ref)

    print("KERNEL_OK")
</pallas_src>

<mosaic_0001>
module attributes {stable_mosaic.version = 11 : i64} {
  func.func @_layer1_kernel(%arg0: i32, %arg1: memref<128x256xbf16, #tpu.memory_space<vmem>>, %arg2: memref<256x128xbf16, #tpu.memory_space<vmem>>, %arg3: memref<1x128xf32, #tpu.memory_space<vmem>>, %arg4: memref<128x128xbf16, #tpu.memory_space<vmem>>, %arg5: memref<128x128xbf16, #tpu.memory_space<vmem>>) attributes {dimension_semantics = [#tpu.dimension_semantics<parallel>], iteration_bounds = array<i64: 2>, scalar_prefetch = 0 : i64, scratch_operands = 0 : i64, tpu.core_type = #tpu.core_type<tc>, window_params = [{transform_indices = @transform_0, window_bounds = array<i64: 128, 256>}, {pipeline_mode = #tpu.pipeline_mode<synchronous>, transform_indices = @transform_1, window_bounds = array<i64: 256, 128>}, {pipeline_mode = #tpu.pipeline_mode<synchronous>, transform_indices = @transform_2, window_bounds = array<i64: 1, 128>}, {pipeline_mode = #tpu.pipeline_mode<synchronous>, transform_indices = @transform_3, window_bounds = array<i64: 128, 128>}, {transform_indices = @transform_4, window_bounds = array<i64: 128, 128>}]} {
    %c0 = arith.constant 0 : index
    %c0_0 = arith.constant 0 : index
    %0 = vector.load %arg1[%c0, %c0_0] : memref<128x256xbf16, #tpu.memory_space<vmem>>, vector<128x256xbf16>
    %c0_1 = arith.constant 0 : index
    %c0_2 = arith.constant 0 : index
    %1 = vector.load %arg2[%c0_1, %c0_2] : memref<256x128xbf16, #tpu.memory_space<vmem>>, vector<256x128xbf16>
    %cst = arith.constant dense<0.000000e+00> : vector<128x128xf32>
    %2 = tpu.matmul %0, %1, %cst {dimension_numbers = #tpu.dot_dimension_numbers<[1], [0], [0], [1], [0, 0, 1, 1], [], []>} : vector<128x256xbf16>, vector<256x128xbf16>, vector<128x128xf32> -> vector<128x128xf32>
    %c0_3 = arith.constant 0 : index
    %c0_4 = arith.constant 0 : index
    %3 = vector.load %arg3[%c0_3, %c0_4] : memref<1x128xf32, #tpu.memory_space<vmem>>, vector<1x128xf32>
    %4 = vector.broadcast %3 : vector<1x128xf32> to vector<128x128xf32>
    %5 = arith.addf %2, %4 : vector<128x128xf32>
    %cst_5 = arith.constant 0.000000e+00 : f32
    %6 = vector.broadcast %cst_5 : f32 to vector<128x128xf32>
    %7 = arith.maximumf %5, %6 : vector<128x128xf32>
    %8 = arith.truncf %7 : vector<128x128xf32> to vector<128x128xbf16>
    %c0_6 = arith.constant 0 : index
    %c0_7 = arith.constant 0 : index
    %9 = vector.load %arg4[%c0_6, %c0_7] : memref<128x128xbf16, #tpu.memory_space<vmem>>, vector<128x128xbf16>
    %cst_8 = arith.constant dense<0.000000e+00> : vector<128x128xf32>
    %10 = tpu.matmul %8, %9, %cst_8 {dimension_numbers = #tpu.dot_dimension_numbers<[1], [0], [0], [1], [0, 0, 1, 1], [], []>} : vector<128x128xbf16>, vector<128x128xbf16>, vector<128x128xf32> -> vector<128x128xf32>
    %11 = arith.truncf %10 : vector<128x128xf32> to vector<128x128xbf16>
    %c0_9 = arith.constant 0 : index
    %c0_10 = arith.constant 0 : index
    %12 = vector.load %arg5[%c0_9, %c0_10] : memref<128x128xbf16, #tpu.memory_space<vmem>>, vector<128x128xbf16>
    tpu.vector_store %arg5[%c0_9, %c0_10], %11 {strides = array<i32>} : memref<128x128xbf16, #tpu.memory_space<vmem>>, vector<128x128xbf16>,
    return
  }
  func.func @transform_0(%arg0: i32) -> (i32, i32) {
    %c0_i32 = arith.constant 0 : i32
    %c0_i32_0 = arith.constant 0 : i32
    return %arg0, %c0_i32 : i32, i32
  }
  func.func @transform_1(%arg0: i32) -> (i32, i32) {
    %c0_i32 = arith.constant 0 : i32
    %c0_i32_0 = arith.constant 0 : i32
    %c0_i32_1 = arith.constant 0 : i32
    return %c0_i32, %c0_i32_0 : i32, i32
  }
  func.func @transform_2(%arg0: i32) -> (i32, i32) {
    %c0_i32 = arith.constant 0 : i32
    %c0_i32_0 = arith.constant 0 : i32
    %c0_i32_1 = arith.constant 0 : i32
    return %c0_i32, %c0_i32_0 : i32, i32
  }
  func.func @transform_3(%arg0: i32) -> (i32, i32) {
    %c0_i32 = arith.constant 0 : i32
    %c0_i32_0 = arith.constant 0 : i32
    %c0_i32_1 = arith.constant 0 : i32
    return %c0_i32, %c0_i32_0 : i32, i32
  }
  func.func @transform_4(%arg0: i32) -> (i32, i32) {
    %c0_i32 = arith.constant 0 : i32
    %c0_i32_0 = arith.constant 0 : i32
    return %arg0, %c0_i32 : i32, i32
  }
}

</mosaic_0001>

<bundles_post_ra>
// kernel: tpu_custom_call.1
= control target key start
LH: loop header
LB: loop body
LE: loop exit
PB: predicated region body
PF: predicated region fallthrough
CT: control target
= control target key end

     0   :  { %9 = vsyncpa [#allocation3], 0  ;;  %s1790_s0 = inlined_call_operand.hbm [shape: bf16[256,256], index: 0, kind: input, shape index: {}]   ;;  %s1791_s1 = inlined_call_operand.hbm [shape: bf16[256,128], index: 1, kind: input, shape index: {}]   ;;  %s1792_s2 = inlined_call_operand.vmem [shape: f32[1,128], index: 2, kind: input, shape index: {}]   ;;  %s1793_s3 = inlined_call_operand.hbm [shape: bf16[128,128], index: 3, kind: input, shape index: {}]   ;;  %s1794_s4 = inlined_call_operand.hbm [shape: bf16[256,128], index: 4, kind: output, shape index: {}]  }
   0x1   :  { %11 = vsyncpa [#allocation3 + $0x1], 0 }
   0x2   :  { %12 = vsyncpa [#allocation6], 0 }
   0x3   :  { %13 = vsyncpa [#allocation4], 0 }
   0x4   :  { %15 = vsyncpa [#allocation4 + $0x1], 0  ;;  %s1516_s15 = smov 0   ;;  %s1518_s16 = smov 0  }
   0x5   :  { %s1520_s17 = smov 0   ;;  %s1522_s18 = smov 0  }
   0x6 LB: > { %s1537_s19 = sadd.s32 4294967295, %s1479_s18   ;;  %s948_s20 = sadd.s32 4294967294, %s1479_s18   ;;  %s1479_s18 = sphi %s1522_s18, %s1814_s18   ;;  %s1475_s17 = sphi %s1520_s17, %s1813_s17   ;;  %s1471_s16 = sphi %s1518_s16, %s1812_s16   ;;  %s1467_s15 = sphi %s1516_s15, %s1811_s15  }
   0x7   : > { %p41_p0 = scmp.ne.s32.totalorder %s1471_s16, %s1467_s15  ;;  %p1795_p1 = scmp.eq.s32.totalorder %s1537_s19, 0 }
   0x8   : > { %p134_p3 = scmp.eq.s32.totalorder %s948_s20, 1  ;;  %p949_p5 = scmp.ge.s32.totalorder %s1479_s18, 1 }
   0x9   : > { %p1546_p4 = por %p1795_p1, %p41_p0  ;;  %p141_p7 = scmp.lt.s32.totalorder %s1479_s18, 3 }
   0xa   : > { %p1551_p6 = por %p134_p3, %p41_p0  ;;  %s1481_s24 = smov [#allocation5]  }
   0xb   : > { %s1798_s21 = scalar_select %p1546_p4, 1, 0 }
   0xc   : > { %s1799_s22 = scalar_select %p1551_p6, 1, 0 }
   0xd   : > { %p1556_p8 = pnand %p949_p5, %p141_p7  ;;  %s153_s25 = sshll.u32 %s1481_s24, 4  ;;  %s1560_s25 = int_to_ptr.vmem [resolvable:$true] %s153_s25 }
   0xe   : > { %s1482_s27 = smov [#allocation7]   ;;  %s1323_s5 = scalar_lea.hbm %s1791_s1, 2048 }
   0xf   : > { %p1214_p9 = pneg %p1556_p8  ;;  %s169_s28 = sshll.u32 %s1482_s27, 4  ;;  %s1571_s28 = int_to_ptr.vmem [resolvable:$true] %s169_s28 }
  0x10   : > { %p1324_p12 = scmp.ne.s32.totalorder %s1791_s1, %s1323_s5  ;;  %p1330_p5 = scmp.lt.u32.totalorder %s1323_s5, %s1791_s1 }
  0x11   : > { %p1567_p11 = pnand %p1214_p9, %p1795_p1 }
  0x13   : > { %p1325_p13 = pneg %p1567_p11 }
  0x15   : > { %p1326_p0 = pnand %p1325_p13, %p1324_p12 }
  0x17   : > { %p1327_p3 = pneg %p1326_p0 }
  0x19   : > { %p1332_p7 = pnand %p1330_p5, %p1327_p3 }
  0x1b   : > { %1335 = shalt.err (!%p1332_p7)
}
  0x1c   : > { %s1336_s10 = scalar_lea.vmem %s1560_s25, 2048  ;;  %p1344_p2 = scmp.lt.s32.totalorder %s1560_s25, %s1560_s25 }
  0x1d   : > { %p1337_p9 = scmp.ne.s32.totalorder %s1560_s25, %s1336_s10  ;;  %p1345_p12 = scmp.lt.s32.totalorder %s1336_s10, %s1336_s10 }
  0x1f   : > { %p1339_p10 = pnand %p1337_p9, %p1325_p13  ;;  %p1346_p0 = por %p1345_p12, %p1344_p2 }
  0x21   : > { %p1340_p1 = pneg %p1339_p10 }
  0x23   : > { %p1347_p6 = pnand %p1346_p0, %p1340_p1 }
  0x25   : > { %1350 = shalt.err (!%p1347_p6)
}
  0x26   : > { %s1483_s11 = smov 64   ;;  %s1484_s12 = smov 4  }
  0x27   : > { %1217 = dma.hbm_to_vmem [thread:$0]  (!%p1567_p11), %s1791_s1, 2048, %s1560_s25, [#allocation6], %s1483_s11, %s1483_s11, %s1484_s12  }
  0x28   : > { %s1351_s27 = scalar_lea.hbm %s1793_s3, 1024 }
  0x29   : > { %p1352_p2 = scmp.ne.s32.totalorder %s1793_s3, %s1351_s27  ;;  %p1358_p10 = scmp.lt.u32.totalorder %s1351_s27, %s1793_s3 }
  0x2b   : > { %p1354_p1 = pnand %p1352_p2, %p1325_p13 }
  0x2d   : > { %p1355_p6 = pneg %p1354_p1 }
  0x2f   : > { %p1360_p3 = pnand %p1358_p10, %p1355_p6 }
  0x31   : > { %1363 = shalt.err (!%p1360_p3)
}
  0x32   : > { %s1364_s25 = scalar_lea.vmem %s1571_s28, 1024  ;;  %p1372_p12 = scmp.lt.s32.totalorder %s1571_s28, %s1571_s28 }
  0x33   : > { %p1365_p5 = scmp.ne.s32.totalorder %s1571_s28, %s1364_s25  ;;  %p1373_p0 = scmp.lt.s32.totalorder %s1364_s25, %s1364_s25 }
  0x35   : > { %p1367_p7 = pnand %p1365_p5, %p1325_p13  ;;  %p1374_p2 = por %p1373_p0, %p1372_p12 }
  0x37   : > { %p1368_p9 = pneg %p1367_p7 }
  0x39   : > { %p1375_p1 = pnand %p1374_p2, %p1368_p9 }
  0x3b   : > { %1378 = shalt.err (!%p1375_p1)
}
  0x3c   : > { %1220 = dma.hbm_to_vmem [thread:$0]  (!%p1567_p11), %s1793_s3, 1024, %s1571_s28, [#allocation6], %s1483_s11, %s1483_s11, %s1484_s12  }
  0x3d   : > { %s1626_s9 = sadd.s32 1, %s1479_s18   ;;  %s28_s26 = sadd.s32 1, %s1475_s17 }
  0x3e   : > { %s25_s10 = ssub.s32 %s1479_s18, %s1626_s9  ;;  %p35_p13 = scmp.ne.s32.totalorder %s1475_s17, %s1471_s16 }
  0x3f   : > { %p26_p6 = scmp.eq.s32.totalorder %s25_s10, 0  ;;  %p36_p10 = scmp.eq.s32.totalorder %s1479_s18, 0 }
  0x40   : > { %p1802_p3 = scmp.eq.s32.totalorder %s1537_s19, 1  ;;  %p1231_p7 = scmp.lt.s32.totalorder %s1479_s18, 2 }
  0x41   : > { %s1642_s14 = scalar_select %p26_p6, %s1475_s17, %s28_s26  }
  0x42   : > { %p1636_p5 = por %p1802_p3, %p35_p13  ;;  %p37_p9 = por %p36_p10, %p35_p13 }
  0x43   : > { %s183_s20 = sand.u32 1, %s1475_s17   ;;  %s1025_s28 = sshll.u32 %s1479_s18, 11 }
  0x44   : > { %s1803_s13 = scalar_select %p1636_p5, 1, 0 }
  0x45   : > { %s953_s24 = sshll.u32 %s183_s20, 7  ;;  %s1649_s27 = scalar_lea.hbm %s1790_s0, %s1025_s28 }
  0x46   : > { %s187_s29 = scalar_lea.vmem [#allocation2], %s953_s24  ;;  %p1653_p11 = pnand %p1231_p7, %p37_p9 }
  0x47   : > { %s195_s30 = sshll.u32 %s187_s29, 4  ;;  %s1657_s6 = scalar_lea.sflag [#allocation3], %s183_s20  ;;  %s1651_s30 = int_to_ptr.vmem [resolvable:$true] %s195_s30 }
  0x48   : > { %s1379_s25 = scalar_lea.hbm %s1649_s27, 2048  ;;  %p1381_p0 = pneg %p1653_p11 }
  0x49   : > { %p1380_p12 = scmp.ne.s32.totalorder %s1649_s27, %s1379_s25  ;;  %s1384_s26 = scalar_lea.hbm %s1790_s0, 4096 }
  0x4a   : > { %p1385_p13 = scmp.lt.u32.totalorder %s1649_s27, %s1790_s0  ;;  %p1386_p6 = scmp.lt.u32.totalorder %s1384_s26, %s1379_s25 }
  0x4b   : > { %p1382_p2 = pnand %p1381_p0, %p1380_p12  ;;  %p1388_p3 = scmp.lt.u32.totalorder %s1379_s25, %s1649_s27 }
  0x4c   : > { %p1387_p10 = por %p1386_p6, %p1385_p13 }
  0x4d   : > { %p1383_p1 = pneg %p1382_p2 }
  0x4e   : > { %p1389_p7 = por %p1388_p3, %p1387_p10 }
  0x50   : > { %p1390_p9 = pnand %p1389_p7, %p1383_p1 }
  0x52   : > { %1393 = shalt.err (!%p1390_p9)
}
  0x53   : > { %s1394_s20 = scalar_lea.vmem %s1651_s30, 2048  ;;  %s1485_s28 = smov [#allocation2]  }
  0x54   : > { %p1395_p12 = scmp.ne.s32.totalorder %s1651_s30, %s1394_s20  ;;  %s1399_s11 = sshll.u32 %s1485_s28, 4  ;;  %s1400_s11 = int_to_ptr.vmem [resolvable:$false] %s1399_s11 }
  0x55   : > { %s1401_s12 = scalar_lea.vmem %s1400_s11, 4096  ;;  %p1402_p4 = scmp.lt.s32.totalorder %s1651_s30, %s1400_s11 }
  0x56   : > { %p1397_p2 = pnand %p1395_p12, %p1381_p0  ;;  %p1403_p13 = scmp.lt.s32.totalorder %s1401_s12, %s1394_s20 }
  0x58   : > { %p1398_p5 = pneg %p1397_p2  ;;  %p1404_p6 = por %p1403_p13, %p1402_p4 }
  0x5a   : > { %p1405_p10 = pnand %p1404_p6, %p1398_p5 }
  0x5c   : > { %1408 = shalt.err (!%p1405_p10)
}
  0x5d   : > { %s1486_s29 = smov 128   ;;  %s1487_s25 = smov 8  }
  0x5e   : > { %1224 = dma.hbm_to_vmem [thread:$0]  (!%p1653_p11), %s1649_s27, 2048, %s1651_s30, %s1657_s6, %s1486_s29, %s1486_s29, %s1487_s25  }
  0x5f   : > { %207 = sbr.rel (%p1556_p8) target bundleno = 650 (0x28a), region = 36  ;;  %s1688_s7 = sand.u32 (!%p1556_p8), 1, %s1471_s16  }
  0x60   : > { %s958_s8 = sshll.u32 (!%p1556_p8), %s1688_s7, 7  ;;  %s210_s26 = scalar_lea.sflag (!%p1556_p8), [#allocation3], %s1688_s7 }
  0x61   : > { %s1692_s10 = scalar_lea.vmem (!%p1556_p8), [#allocation2], %s958_s8  ;;  %p1805_p4 = scmp.ne.s32.totalorder (!%p1556_p8), %s1798_s21, 0 }
  0x66   : > { %1454 = dma.done.wait (%p1805_p4), %s210_s26, 2048  }
  0x67   : > { %1456 = vsyncadd (%p1805_p4), %s210_s26, 4294965248  ;;  %p1806_p5 = scmp.eq.s32.totalorder %s1537_s19, 0 }
  0x69   : > { %1458 = dma.done.wait (%p1806_p5), [#allocation6], 3072   ;;  %p1807_p8 = pmov %p1806_p5 }
  0x6a   : > { %v1275_v0 = vld [vmem:[#allocation5 + $0x40] sm:$0xff]   ;;  %v1277_v2 = vld [vmem:[#allocation5 + $0x48] sm:$0xff]   ;;  %v1279_v4 = vld [vmem:[#allocation5 + $0x50] sm:$0xff]   ;;  %s961_s27 = sshll.u32 %s1688_s7, 6  ;;  %s1042_s6 = sshll.u32 %s1537_s19, 10 }
  0x6b   : > { %1460 = vsyncadd (%p1807_p8), [#allocation6], 4294964224  ;;  %v1276_v1 = vld [vmem:[#allocation5] sm:$0xff]   ;;  %1090 = vmatprep.subr.bf16.mxu0 %v1275_v0  ;;  %v1278_v3 = vld [vmem:[#allocation5 + $0x8] sm:$0xff]   ;;  %s245_s30 = scalar_lea.vmem [#allocation8], %s961_s27  ;;  %s1746_s28 = scalar_lea.hbm %s1794_s4, %s1042_s6 }
  0x6c   : > { %1091 = vmatpush3.bf16.msra.mxu0 %v1276_v1  ;;  %v1280_v5 = vld [vmem:[#allocation5 + $0x10] sm:$0xff]   ;;  %v1281_v6 = vld [vmem:[#allocation5 + $0x58] sm:$0xff]   ;;  %v1283_v8 = vld [vmem:[#allocation5 + $0x60] sm:$0xff]   ;;  %s856_s5 = sshll.u32 %s245_s30, 4  ;;  %s843_s11 = scalar_lea.sflag [#allocation4], %s1688_s7  ;;  %s1741_s5 = int_to_ptr.vmem [resolvable:$true] %s856_s5 }
  0x6d   : > { %1092 = vmatprep.subr.bf16.mxu0 %v1277_v2  ;;  %v1282_v7 = vld [vmem:[#allocation5 + $0x18] sm:$0xff]   ;;  %v1284_v9 = vld [vmem:[#allocation5 + $0x20] sm:$0xff]   ;;  %v1285_v10 = vld [vmem:[#allocation5 + $0x68] sm:$0xff]   ;;  %s1409_s12 = scalar_lea.vmem %s1741_s5, 1024  ;;  %p1808_p0 = scmp.ne.s32.totalorder %s1803_s13, 0 }
  0x6e   : > { %v1293_v11 = vld [vmem:[%s1692_s10 + $0x4] ss:$8 sps:$4 sm:$0xff]   ;;  %v1287_v13 = vld [vmem:[#allocation5 + $0x70] sm:$0xff]   ;;  %v1289_v15 = vld [vmem:[#allocation5 + $0x78] sm:$0xff]   ;;  %p1410_p11 = scmp.ne.s32.totalorder %s1741_s5, %s1409_s12  ;;  %s1488_s19 = smov [#allocation8]  }
  0x6f   : > { %v1286_v12 = vld [vmem:[#allocation5 + $0x28] sm:$0xff]   ;;  %512 = vmatprep.mubr.bf16.mxu0 %v1293_v11  ;;  %v1288_v14 = vld [vmem:[#allocation5 + $0x30] sm:$0xff]   ;;  %v1290_v16 = vld [vmem:[#allocation5 + $0x38] sm:$0xff]   ;;  %s1413_s29 = sshll.u32 %s1488_s19, 4  ;;  %s1414_s29 = int_to_ptr.vmem [resolvable:$false] %s1413_s29 }
  0x70   : > { %1093 = vmatpush3.bf16.msra.mxu0 %v1278_v3  ;;  %v1315_v17 = vld [vmem:[#allocation7] sm:$0xff]   ;;  %v1316_v19 = vld [vmem:[#allocation7 + $0x8] sm:$0xff]   ;;  %v1294_v20 = vld [vmem:[%s1692_s10 + $0x14] ss:$8 sps:$4 sm:$0xff]   ;;  %p1411_p1 = pnand %p1410_p11, %p1808_p0  ;;  %s1415_s25 = scalar_lea.vmem %s1414_s29, 2048 }
  0x71   : > { %1094 = vmatprep.subr.bf16.mxu0 %v1279_v4  ;;  %v1291_v18 = vld [vmem:[%s1692_s10] ss:$8 sps:$4 sm:$0xff]   ;;  %1170 = vmatprep.subr.bf16.mxu1 %v1315_v17  ;;  %v1317_v21 = vld [vmem:[#allocation7 + $0x10] sm:$0xff]   ;;  %v1297_v23 = vld [vmem:[%s1692_s10 + $0x24] ss:$8 sps:$4 sm:$0xff]   ;;  %p1416_p7 = scmp.lt.s32.totalorder %s1741_s5, %s1414_s29  ;;  %p1417_p9 = scmp.lt.s32.totalorder %s1415_s25, %s1409_s12 }
  0x72   : > { %1171 = vmatpush3.bf16.msra.mxu1 %v1315_v17  ;;  %v1296_v22 = vld [vmem:[%s1692_s10 + $0x10] ss:$8 sps:$4 sm:$0xff]   ;;  %v1299_v24 = vld [vmem:[%s1692_s10 + $0x20] ss:$8 sps:$4 sm:$0xff]   ;;  %v1300_v25 = vld [vmem:[%s1692_s10 + $0x34] ss:$8 sps:$4 sm:$0xff]   ;;  %p1412_p3 = pneg %p1411_p1 }
  0x73   : > { %1172 = vmatprep.subr.bf16.mxu1 %v1316_v19  ;;  %v1302_v26 = vld [vmem:[%s1692_s10 + $0x30] ss:$8 sps:$4 sm:$0xff]   ;;  %v1303_v27 = vld [vmem:[%s1692_s10 + $0x44] ss:$8 sps:$4 sm:$0xff]   ;;  %v1305_v28 = vld [vmem:[%s1692_s10 + $0x40] ss:$8 sps:$4 sm:$0xff]   ;;  %p1418_p12 = por %p1417_p9, %p1416_p7 }
  0x74   : > { %1095 = vmatpush3.bf16.msra.mxu0 %v1280_v5  ;;  %v1306_v29 = vld [vmem:[%s1692_s10 + $0x54] ss:$8 sps:$4 sm:$0xff]   ;;  %v1308_v30 = vld [vmem:[%s1692_s10 + $0x50] ss:$8 sps:$4 sm:$0xff]   ;;  %v1309_v31 = vld [vmem:[%s1692_s10 + $0x64] ss:$8 sps:$4 sm:$0xff]  }
  0x75   : > { %1096 = vmatprep.subr.bf16.mxu0 %v1281_v6  ;;  %v1311_v32 = vld [vmem:[%s1692_s10 + $0x60] ss:$8 sps:$4 sm:$0xff]   ;;  %v1312_v33 = vld [vmem:[%s1692_s10 + $0x74] ss:$8 sps:$4 sm:$0xff]   ;;  %v1314_v34 = vld [vmem:[%s1692_s10 + $0x70] ss:$8 sps:$4 sm:$0xff]   ;;  %p1419_p2 = pnand %p1418_p12, %p1412_p3 }
  0x76   : > { %1173 = vmatpush3.bf16.msra.mxu1 %v1316_v19  ;;  %v1318_v35 = vld [vmem:[#allocation7 + $0x18] sm:$0xff]   ;;  %v1319_v36 = vld [vmem:[#allocation7 + $0x20] sm:$0xff]   ;;  %v1320_v37 = vld [vmem:[#allocation7 + $0x28] sm:$0xff]  }
  0x77   : > { %1174 = vmatprep.subr.bf16.mxu1 %v1317_v21  ;;  %v1321_v38 = vld [vmem:[#allocation7 + $0x30] sm:$0xff]   ;;  %v1322_v39 = vld [vmem:[#allocation7 + $0x38] sm:$0xff]   ;;  %v1721_v42 = vld [vmem:[%s1792_s2] ss:$0 sm:$0xff] }
  0x78   : > { %1097 = vmatpush3.bf16.msra.mxu0 %v1282_v7 }
  0x79   : > { %1098 = vmatprep.subr.bf16.mxu0 %v1283_v8 }
  0x7a   : > { %1175 = vmatpush3.bf16.msra.mxu1 %v1317_v21 }
  0x7b   : > { %1176 = vmatprep.subr.bf16.mxu1 %v1318_v35 }
  0x7c   : > { %1099 = vmatpush3.bf16.msra.mxu0 %v1284_v9 }
  0x7d   : > { %1100 = vmatprep.subr.bf16.mxu0 %v1285_v10 }
  0x7e   : > { %1177 = vmatpush3.bf16.msra.mxu1 %v1318_v35 }
  0x7f   : > { %1178 = vmatprep.subr.bf16.mxu1 %v1319_v36 }
  0x80   : > { %1101 = vmatpush3.bf16.msra.mxu0 %v1286_v12 }
  0x81   : > { %1102 = vmatprep.subr.bf16.mxu0 %v1287_v13 }
  0x82   : > { %1179 = vmatpush3.bf16.msra.mxu1 %v1319_v36 }
  0x83   : > { %1180 = vmatprep.subr.bf16.mxu1 %v1320_v37 }
  0x84   : > { %1103 = vmatpush3.bf16.msra.mxu0 %v1288_v14 }
  0x85   : > { %1104 = vmatprep.subr.bf16.mxu0 %v1289_v15 }
  0x86   : > { %1181 = vmatpush3.bf16.msra.mxu1 %v1320_v37 }
  0x87   : > { %1182 = vmatprep.subr.bf16.mxu1 %v1321_v38 }
  0x88   : > { %1105 = vmatpush3.bf16.msra.mxu0 %v1290_v16 }
  0x8a   : > { %1183 = vmatpush3.bf16.msra.mxu1 %v1321_v38 }
  0x8b   : > { %513 = vmatmul.mubr.bf16.vlgmr.msra.gmra.mrb[0].mxu0 %v1291_v18  ;;  %1184 = vmatprep.subr.bf16.mxu1 %v1322_v39 }
  0x8c   : > { %520 = vmatprep.mubr.bf16.mxu0 %v1294_v20 }
  0x8e   : > { %1185 = vmatpush3.bf16.msra.mxu1 %v1322_v39 }
  0x93   : > { %521 = vmatmul.mubr.bf16.gmra.mrb[4].mxu0 %v1296_v22 }
  0x94   : > { %528 = vmatprep.mubr.bf16.mxu0 %v1297_v23 }
  0x9b   : > { %529 = vmatmul.mubr.bf16.gmra.mrb[8].mxu0 %v1299_v24 }
  0x9c   : > { %536 = vmatprep.mubr.bf16.mxu0 %v1300_v25 }
  0xa3   : > { %537 = vmatmul.mubr.bf16.gmra.mrb[12].mxu0 %v1302_v26 }
  0xa4   : > { %544 = vmatprep.mubr.bf16.mxu0 %v1303_v27 }
  0xab   : > { %545 = vmatmul.mubr.bf16.gmra.mrb[16].mxu0 %v1305_v28 }
  0xac   : > { %552 = vmatprep.mubr.bf16.mxu0 %v1306_v29 }
  0xb3   : > { %553 = vmatmul.mubr.bf16.gmra.mrb[20].mxu0 %v1308_v30 }
  0xb4   : > { %560 = vmatprep.mubr.bf16.mxu0 %v1309_v31 }
  0xbb   : > { %561 = vmatmul.mubr.bf16.gmra.mrb[24].mxu0 %v1311_v32 }
  0xbc   : > { %568 = vmatprep.mubr.bf16.mxu0 %v1312_v33 }
  0xc3   : > { %569 = vmatmul.mubr.bf16.gmra.mrb[28].mxu0 %v1314_v34 }
 0x15e   : > { %v1106_v40 = vpop.f32.mrb[0].mxu0 }
 0x15f   : > { %v1107_v41 = vpop.f32.mrb[1].mxu0 }
 0x160   : > { %v1108_v43 = vadd.f32 %v1107_v41, %v1106_v40  ;;  %v1109_v44 = vpop.f32.mrb[2].mxu0 }
 0x161   : > { %v1110_v45 = vpop.f32.mrb[3].mxu0 }
 0x162   : > { %v1111_v46 = vadd.f32 %v1110_v45, %v1109_v44  ;;  %v515_v47 = vadd.f32 %v1108_v43, %v1721_v42 }
 0x164   : > { %v518_v48 = vadd.f32 %v1111_v46, %v1721_v42  ;;  %v577_v50 = vmax.f32 %v515_v47, 0.0 }
 0x166   : > { %v1112_v49 = vpop.f32.mrb[4].mxu0  ;;  %v578_v51 = vmax.f32 %v518_v48, 0.0 }
 0x167   : > { %v1113_v52 = vpop.f32.mrb[5].mxu0 }
 0x168   : > { %v1114_v53 = vadd.f32 %v1113_v52, %v1112_v49  ;;  %v1115_v54 = vpop.f32.mrb[6].mxu0  ;;  %v593_v55 = vpack.c.bf16 %v578_v51, %v577_v50 }
 0x169   : > { %v1116_v56 = vpop.f32.mrb[7].mxu0 }
 0x16a   : > { %v523_v57 = vadd.f32 %v1114_v53, %v1721_v42  ;;  %v1117_v58 = vadd.f32 %v1116_v56, %v1115_v54  ;;  %1186 = vmatprep.mubr.bf16.mxu1 %v593_v55 }
 0x16c   : > { %v526_v59 = vadd.f32 %v1117_v58, %v1721_v42  ;;  %v579_v60 = vmax.f32 %v523_v57, 0.0 }
 0x16e   : > { %v580_v61 = vmax.f32 %v526_v59, 0.0  ;;  %v1118_v62 = vpop.f32.mrb[8].mxu0 }
 0x16f   : > { %v1119_v63 = vpop.f32.mrb[9].mxu0 }
 0x170   : > { %v1120_v0 = vadd.f32 %v1119_v63, %v1118_v62  ;;  %v1121_v1 = vpop.f32.mrb[10].mxu0  ;;  %v594_v2 = vpack.c.bf16 %v580_v61, %v579_v60 }
 0x171   : > { %v1122_v3 = vpop.f32.mrb[11].mxu0 }
 0x172   : > { %v531_v4 = vadd.f32 %v1120_v0, %v1721_v42  ;;  %v1123_v5 = vadd.f32 %v1122_v3, %v1121_v1  ;;  %1187 = vmatmul.mubr.bf16.vlgmr.msra.gmra.mrb[0].mxu1 %v594_v2 }
 0x174   : > { %v534_v6 = vadd.f32 %v1123_v5, %v1721_v42  ;;  %v581_v7 = vmax.f32 %v531_v4, 0.0 }
 0x176   : > { %v582_v8 = vmax.f32 %v534_v6, 0.0  ;;  %v1124_v9 = vpop.f32.mrb[12].mxu0 }
 0x177   : > { %v1125_v10 = vpop.f32.mrb[13].mxu0 }
 0x178   : > { %v1126_v11 = vadd.f32 %v1125_v10, %v1124_v9  ;;  %v1127_v12 = vpop.f32.mrb[14].mxu0  ;;  %v595_v13 = vpack.c.bf16 %v582_v8, %v581_v7 }
 0x179   : > { %v1128_v14 = vpop.f32.mrb[15].mxu0 }
 0x17a   : > { %v539_v15 = vadd.f32 %v1126_v11, %v1721_v42  ;;  %v1129_v16 = vadd.f32 %v1128_v14, %v1127_v12  ;;  %1190 = vmatprep.mubr.bf16.mxu1 %v595_v13 }
 0x17c   : > { %v542_v17 = vadd.f32 %v1129_v16, %v1721_v42  ;;  %v583_v18 = vmax.f32 %v539_v15, 0.0 }
 0x17e   : > { %v584_v19 = vmax.f32 %v542_v17, 0.0  ;;  %v1130_v20 = vpop.f32.mrb[16].mxu0 }
 0x17f   : > { %v1131_v21 = vpop.f32.mrb[17].mxu0 }
 0x180   : > { %v1132_v22 = vadd.f32 %v1131_v21, %v1130_v20  ;;  %v1133_v23 = vpop.f32.mrb[18].mxu0  ;;  %v596_v24 = vpack.c.bf16 %v584_v19, %v583_v18 }
 0x181   : > { %v1134_v25 = vpop.f32.mrb[19].mxu0 }
 0x182   : > { %v547_v26 = vadd.f32 %v1132_v22, %v1721_v42  ;;  %v1135_v27 = vadd.f32 %v1134_v25, %v1133_v23  ;;  %1191 = vmatmul.mubr.bf16.gmra.mrb[4].mxu1 %v596_v24 }
 0x184   : > { %v550_v28 = vadd.f32 %v1135_v27, %v1721_v42  ;;  %v585_v29 = vmax.f32 %v547_v26, 0.0 }
 0x186   : > { %v586_v30 = vmax.f32 %v550_v28, 0.0  ;;  %v1136_v31 = vpop.f32.mrb[20].mxu0 }
 0x187   : > { %v1137_v32 = vpop.f32.mrb[21].mxu0 }
 0x188   : > { %v1138_v33 = vadd.f32 %v1137_v32, %v1136_v31  ;;  %v1139_v34 = vpop.f32.mrb[22].mxu0  ;;  %v597_v35 = vpack.c.bf16 %v586_v30, %v585_v29 }
 0x189   : > { %v1140_v36 = vpop.f32.mrb[23].mxu0 }
 0x18a   : > { %v555_v37 = vadd.f32 %v1138_v33, %v1721_v42  ;;  %v1141_v38 = vadd.f32 %v1140_v36, %v1139_v34  ;;  %1194 = vmatprep.mubr.bf16.mxu1 %v597_v35 }
 0x18c   : > { %v558_v39 = vadd.f32 %v1141_v38, %v1721_v42  ;;  %v587_v40 = vmax.f32 %v555_v37, 0.0 }
 0x18e   : > { %v588_v41 = vmax.f32 %v558_v39, 0.0  ;;  %v1142_v43 = vpop.f32.mrb[24].mxu0 }
 0x18f   : > { %v1143_v44 = vpop.f32.mrb[25].mxu0 }
 0x190   : > { %v1144_v45 = vadd.f32 %v1143_v44, %v1142_v43  ;;  %v1145_v46 = vpop.f32.mrb[26].mxu0  ;;  %v598_v47 = vpack.c.bf16 %v588_v41, %v587_v40 }
 0x191   : > { %v1146_v48 = vpop.f32.mrb[27].mxu0 }
 0x192   : > { %v563_v49 = vadd.f32 %v1144_v45, %v1721_v42  ;;  %v1147_v50 = vadd.f32 %v1146_v48, %v1145_v46  ;;  %1195 = vmatmul.mubr.bf16.gmra.mrb[8].mxu1 %v598_v47 }
 0x194   : > { %v566_v51 = vadd.f32 %v1147_v50, %v1721_v42  ;;  %v589_v52 = vmax.f32 %v563_v49, 0.0 }
 0x196   : > { %v590_v53 = vmax.f32 %v566_v51, 0.0  ;;  %v1148_v54 = vpop.f32.mrb[28].mxu0 }
 0x197   : > { %v1149_v55 = vpop.f32.mrb[29].mxu0 }
 0x198   : > { %v1150_v56 = vadd.f32 %v1149_v55, %v1148_v54  ;;  %v1151_v57 = vpop.f32.mrb[30].mxu0  ;;  %v599_v58 = vpack.c.bf16 %v590_v53, %v589_v52 }
 0x199   : > { %v1152_v59 = vpop.f32.mrb[31].mxu0 }
 0x19a   : > { %v571_v60 = vadd.f32 %v1150_v56, %v1721_v42  ;;  %v1153_v61 = vadd.f32 %v1152_v59, %v1151_v57  ;;  %1198 = vmatprep.mubr.bf16.mxu1 %v599_v58 }
 0x19c   : > { %v574_v62 = vadd.f32 %v1153_v61, %v1721_v42  ;;  %v591_v63 = vmax.f32 %v571_v60, 0.0 }
 0x19e   : > { %v592_v0 = vmax.f32 %v574_v62, 0.0 }
 0x1a0   : > { %v600_v1 = vpack.c.bf16 %v592_v0, %v591_v63 }
 0x1a2   : > { %1199 = vmatmul.mubr.bf16.gmra.mrb[12].mxu1 %v600_v1 }
 0x245   : > { %v1188_v2 = vpop.f32.mrb[0].mxu1 }
 0x246   : > { %v699_v3 = vpop.f32.mrb[1].mxu1 }
 0x247   : > { %v1189_v4 = vpop.f32.mrb[2].mxu1 }
 0x248   : > { %v1051_v5 = vpack.c.bf16 %v1189_v4, %v1188_v2  ;;  %v702_v6 = vpop.f32.mrb[3].mxu1 }
 0x249   : > { %v1046_v7 = vpack.c.bf16 %v702_v6, %v699_v3 }
 0x24a   : > { %1083 = vst [vmem:[%s245_s30 + $0x8] sm:$0xff] %v1051_v5  }
 0x24b   : > { %1047 = vst [vmem:[%s245_s30] sm:$0xff] %v1046_v7  }
 0x255   : > { %v1192_v8 = vpop.f32.mrb[4].mxu1 }
 0x256   : > { %v715_v9 = vpop.f32.mrb[5].mxu1 }
 0x257   : > { %v1193_v10 = vpop.f32.mrb[6].mxu1 }
 0x258   : > { %v1061_v11 = vpack.c.bf16 %v1193_v10, %v1192_v8  ;;  %v718_v42 = vpop.f32.mrb[7].mxu1 }
 0x259   : > { %v1056_v12 = vpack.c.bf16 %v718_v42, %v715_v9 }
 0x25a   : > { %1085 = vst [vmem:[%s245_s30 + $0x18] sm:$0xff] %v1061_v11  }
 0x25b   : > { %1084 = vst [vmem:[%s245_s30 + $0x10] sm:$0xff] %v1056_v12  }
 0x265   : > { %v1196_v13 = vpop.f32.mrb[8].mxu1 }
 0x266   : > { %v731_v14 = vpop.f32.mrb[9].mxu1 }
 0x267   : > { %v1197_v15 = vpop.f32.mrb[10].mxu1 }
 0x268   : > { %v1071_v16 = vpack.c.bf16 %v1197_v15, %v1196_v13  ;;  %v734_v17 = vpop.f32.mrb[11].mxu1 }
 0x269   : > { %v1066_v18 = vpack.c.bf16 %v734_v17, %v731_v14 }
 0x26a   : > { %1087 = vst [vmem:[%s245_s30 + $0x28] sm:$0xff] %v1071_v16  }
 0x26b   : > { %1086 = vst [vmem:[%s245_s30 + $0x20] sm:$0xff] %v1066_v18  }
 0x275   : > { %v1200_v19 = vpop.f32.mrb[12].mxu1 }
 0x276   : > { %v747_v20 = vpop.f32.mrb[13].mxu1 }
 0x277   : > { %v1201_v21 = vpop.f32.mrb[14].mxu1 }
 0x278   : > { %v1081_v22 = vpack.c.bf16 %v1201_v21, %v1200_v19  ;;  %v750_v23 = vpop.f32.mrb[15].mxu1 }
 0x279   : > { %v1076_v24 = vpack.c.bf16 %v750_v23, %v747_v20 }
 0x27a   : > { %1089 = vst [vmem:[%s245_s30 + $0x38] sm:$0xff] %v1081_v22  }
 0x27b   : > { %1088 = vst [vmem:[%s245_s30 + $0x30] sm:$0xff] %v1076_v24  }
 0x27c   : > { %1422 = shalt.err (!%p1419_p2)
}
 0x27d   : > { %s1423_s8 = scalar_lea.hbm %s1746_s28, 1024  ;;  %s1427_s21 = scalar_lea.hbm %s1794_s4, 2048 }
 0x27e   : > { %p1424_p13 = scmp.ne.s32.totalorder %s1746_s28, %s1423_s8  ;;  %p1428_p4 = scmp.lt.u32.totalorder %s1746_s28, %s1794_s4 }
 0x27f   : > { %p1429_p5 = scmp.lt.u32.totalorder %s1427_s21, %s1423_s8  ;;  %p1431_p11 = scmp.lt.u32.totalorder %s1423_s8, %s1746_s28 }
 0x280   : > { %p1425_p6 = pnand %p1424_p13, %p1808_p0 }
 0x281   : > { %p1430_p8 = por %p1429_p5, %p1428_p4 }
 0x282   : > { %p1426_p10 = pneg %p1425_p6 }
 0x283   : > { %p1432_p1 = por %p1431_p11, %p1430_p8 }
 0x285   : > { %p1433_p3 = pnand %p1432_p1, %p1426_p10 }
 0x287   : > { %1436 = shalt.err (!%p1433_p3)
}
 0x288   : > { %s1489_s30 = smov 64   ;;  %s1490_s6 = smov 4  }
 0x289   : > { %1212 = dma.vmem_to_hbm [thread:$0]  (%p1808_p0), %s1741_s5, 1024, %s1746_s28, %s843_s11, %s1489_s30, %s1489_s30, %s1490_s6  }
 0x28a PF: > { %s871_s24 = sand.u32 1, %s1467_s15   ;;  %p1809_p7 = scmp.ne.s32.totalorder %s1799_s22, 0 }
 0x28b   : > { %p1810_p9 = scmp.ge.s32.totalorder %s1479_s18, 2  ;;  %s872_s20 = scalar_lea.sflag [#allocation4], %s871_s24 }
 0x28d   : > { %p1226_p12 = pnand %p1810_p9, %p1809_p7 }
 0x28f   : > { %1462 = dma.done.wait (!%p1226_p12), %s872_s20, 1024  }
 0x290   : > { %1464 = vsyncadd (!%p1226_p12), %s872_s20, 4294966272  ;;  %p18_p2 = scmp.ge.s32.totalorder %s1626_s9, 4   ;;  %s1811_s15 = smov %s1471_s16 }
 0x291   : > { %s1812_s16 = smov %s1475_s17  ;;  %s1813_s17 = smov %s1642_s14 }
 0x292   : > { %s1814_s18 = smov %s1626_s9  ;;  %20 = sbr.rel (!%p18_p2) target bundleno = 6 (0x6), region = 89 }
 0x299   :  { %877 = vsyncpa [#allocation3], 1 }
 0x29a   :  { %879 = vsyncpa [#allocation3 + $0x1], 1 }
 0x29b   :  { %880 = vsyncpa [#allocation6], 1 }
 0x29c   :  { %881 = vsyncpa [#allocation4], 1 }
 0x29d   :  { %883 = vsyncpa [#allocation4 + $0x1], 1 }

</bundles_post_ra>
